<compile_context>
chip_gen: v6e
topology: v6e:2x2x1
jax: 0.10.0
libtpu: 0.0.40
codegen_flags: <defaults>
</compile_context>

<pallas_src>
import functools

import jax
import jax.numpy as jnp
from jax.experimental import pallas as pl
from jax.experimental.pallas import tpu as pltpu


def mlp_kernel(t_ref, x_ref, w1_ref, b1_ref, w2_ref, b2_ref,
               wt1_ref, bt1_ref, wt2_ref, bt2_ref, out_ref):
    # network_head: Linear -> ReLU -> Linear -> ReLU
    x = x_ref[...]
    h = jnp.maximum(
        jnp.dot(x, w1_ref[...], preferred_element_type=jnp.float32) + b1_ref[...], 0.0)
    h = jnp.maximum(
        jnp.dot(h, w2_ref[...], preferred_element_type=jnp.float32) + b2_ref[...], 0.0)
    # network_tail[t]: Linear -> ReLU -> Linear -> ReLU (weights already
    # selected by the scalar-prefetched index t via the BlockSpec index_maps)
    h = jnp.maximum(
        jnp.dot(h, wt1_ref[...], preferred_element_type=jnp.float32) + bt1_ref[...], 0.0)
    out = jnp.maximum(
        jnp.dot(h, wt2_ref[...], preferred_element_type=jnp.float32) + bt2_ref[...], 0.0)
    # Fused lane-dense output: lanes [0, D) carry mu unchanged; lanes [D, 2D)
    # carry sigma = sqrt(exp(logvar)) == exp(0.5 * logvar).
    two_d = out_ref.shape[1]
    d = two_d // 2
    lane = jax.lax.broadcasted_iota(jnp.int32, out.shape, dimension=1)
    out_ref[...] = jnp.where(lane < d, out, jnp.exp(0.5 * out))


def _round_up(n, m):
    return ((n + m - 1) // m) * m


@jax.jit
def _call_kernel(t_arr, x, w1, b1, w2, b2, wt1, bt1, wt2, bt2):
    B, D = x.shape
    H = w1.shape[1]

    # Batch tiling: pick the largest tile (<=128 rows, multiple of 8 sublanes)
    # and grid over batch tiles.  Weights use constant index_maps so they stay
    # resident in VMEM across the (parallel) batch grid.
    TB = min(128, _round_up(B, 8))
    Bp = _round_up(B, TB)
    if Bp != B:
        x = jnp.pad(x, ((0, Bp - B), (0, 0)))
    grid = (Bp // TB,)

    grid_spec = pltpu.PrefetchScalarGridSpec(
        num_scalar_prefetch=1,
        grid=grid,
        in_specs=[
            pl.BlockSpec((TB, D), lambda i, t: (i, 0)),                 # x tile
            pl.BlockSpec((D, H), lambda i, t: (0, 0)),                  # head W1
            pl.BlockSpec((1, H), lambda i, t: (0, 0)),                  # head b1
            pl.BlockSpec((H, H), lambda i, t: (0, 0)),                  # head W2
            pl.BlockSpec((1, H), lambda i, t: (0, 0)),                  # head b2
            pl.BlockSpec((None, H, H), lambda i, t: (t[0], 0, 0)),      # tail W1[t]
            pl.BlockSpec((None, 1, H), lambda i, t: (t[0], 0, 0)),      # tail b1[t]
            pl.BlockSpec((None, H, 2 * D), lambda i, t: (t[0], 0, 0)),  # tail W2[t]
            pl.BlockSpec((None, 1, 2 * D), lambda i, t: (t[0], 0, 0)),  # tail b2[t]
        ],
        out_specs=pl.BlockSpec((TB, 2 * D), lambda i, t: (i, 0)),       # [mu|sigma]
    )
    out = pl.pallas_call(
        mlp_kernel,
        out_shape=jax.ShapeDtypeStruct((Bp, 2 * D), jnp.float32),
        grid_spec=grid_spec,
        compiler_params=pltpu.CompilerParams(dimension_semantics=("parallel",)),
    )(t_arr, x, w1, b1, w2, b2, wt1, bt1, wt2, bt2)
    return out[:B]


def mlp_forward(x, t, params):
    """Pallas equivalent of MLP.forward(x, t) -> (mu, sigma)."""
    (w1, b1, w2, b2, wt1, bt1, wt2, bt2) = params
    N = wt1.shape[0]
    t_clamped = min(max(int(t), 0), N - 1)   # host-side bounds guard on the tail index
    t_arr = jnp.asarray([t_clamped], dtype=jnp.int32)
    out = _call_kernel(t_arr, x, w1, b1, w2, b2, wt1, bt1, wt2, bt2)
    D = x.shape[1]
    # chunk(out, 2, dim=1): a free HBM slice outside the kernel.
    return out[:, :D], out[:, D:]


def init_params(key, data_dim=2, hidden_dim=64, N=40):
    """Deterministic init mimicking nn.Linear default (uniform +/- 1/sqrt(fan_in))."""
    def linear(k, fan_in, fan_out):
        kw, kb = jax.random.split(k)
        lim = 1.0 / jnp.sqrt(fan_in)
        w = jax.random.uniform(kw, (fan_in, fan_out), jnp.float32, -lim, lim)
        b = jax.random.uniform(kb, (1, fan_out), jnp.float32, -lim, lim)
        return w, b

    k1, k2, k3, k4 = jax.random.split(key, 4)
    w1, b1 = linear(k1, data_dim, hidden_dim)
    w2, b2 = linear(k2, hidden_dim, hidden_dim)

    kt1 = jax.random.split(k3, N)
    kt2 = jax.random.split(k4, N)
    wt1 = jnp.stack([linear(kt1[i], hidden_dim, hidden_dim)[0] for i in range(N)])
    bt1 = jnp.stack([linear(kt1[i], hidden_dim, hidden_dim)[1] for i in range(N)])
    wt2 = jnp.stack([linear(kt2[i], hidden_dim, 2 * data_dim)[0] for i in range(N)])
    bt2 = jnp.stack([linear(kt2[i], hidden_dim, 2 * data_dim)[1] for i in range(N)])
    return (w1, b1, w2, b2, wt1, bt1, wt2, bt2)


def mlp_reference(x, t, params):
    """Pure-JAX reference (mirrors the PyTorch forward) for correctness checking."""
    (w1, b1, w2, b2, wt1, bt1, wt2, bt2) = params
    h = jax.nn.relu(x @ w1 + b1)
    h = jax.nn.relu(h @ w2 + b2)
    h = jax.nn.relu(h @ wt1[t] + bt1[t])
    out = jax.nn.relu(h @ wt2[t] + bt2[t])
    D = x.shape[1]
    mu, logv = out[:, :D], out[:, D:]
    return mu, jnp.sqrt(jnp.exp(logv))


if __name__ == "__main__":
    data_dim, hidden_dim, N = 2, 64, 40
    t = 3

    key = jax.random.PRNGKey(0)
    kp, kx1, kx2 = jax.random.split(key, 3)
    params = init_params(kp, data_dim=data_dim, hidden_dim=hidden_dim, N=N)

    # Small batch (single grid step, tile padded to 8 sublanes).
    x_small = jax.random.normal(kx1, (8, data_dim), jnp.float32)
    mu, sigma = mlp_forward(x_small, t, params)
    jax.block_until_ready((mu, sigma))
    mu_ref, sigma_ref = mlp_reference(x_small, t, params)
    assert jnp.allclose(mu, mu_ref, atol=1e-5, rtol=1e-5)
    assert jnp.allclose(sigma, sigma_ref, atol=1e-5, rtol=1e-5)

    # Larger batch: exercises multi-tile parallel grid + padding/slice path.
    x_big = jax.random.normal(kx2, (200, data_dim), jnp.float32)
    mu_b, sigma_b = mlp_forward(x_big, t, params)
    jax.block_until_ready((mu_b, sigma_b))
    mu_bref, sigma_bref = mlp_reference(x_big, t, params)
    assert jnp.allclose(mu_b, mu_bref, atol=1e-5, rtol=1e-5)
    assert jnp.allclose(sigma_b, sigma_bref, atol=1e-5, rtol=1e-5)

    print("KERNEL_OK")
</pallas_src>

<mosaic_0001>
module attributes {stable_mosaic.version = 11 : i64} {
  func.func @mlp_kernel(%arg0: i32, %arg1: memref<1xi32, #tpu.memory_space<smem>>, %arg2: memref<8x2xf32, #tpu.memory_space<vmem>>, %arg3: memref<2x64xf32, #tpu.memory_space<vmem>>, %arg4: memref<1x64xf32, #tpu.memory_space<vmem>>, %arg5: memref<64x64xf32, #tpu.memory_space<vmem>>, %arg6: memref<1x64xf32, #tpu.memory_space<vmem>>, %arg7: memref<1x64x64xf32, #tpu.memory_space<vmem>>, %arg8: memref<1x1x64xf32, #tpu.memory_space<vmem>>, %arg9: memref<1x64x4xf32, #tpu.memory_space<vmem>>, %arg10: memref<1x1x4xf32, #tpu.memory_space<vmem>>, %arg11: memref<8x4xf32, #tpu.memory_space<vmem>>) attributes {dimension_semantics = [#tpu.dimension_semantics<parallel>], iteration_bounds = array<i64: 1>, scalar_prefetch = 1 : i64, scratch_operands = 0 : i64, tpu.core_type = #tpu.core_type<tc>, window_params = [{transform_indices = @transform_0, window_bounds = array<i64: 8, 2>}, {pipeline_mode = #tpu.pipeline_mode<synchronous>, transform_indices = @transform_1, window_bounds = array<i64: 2, 64>}, {pipeline_mode = #tpu.pipeline_mode<synchronous>, transform_indices = @transform_2, window_bounds = array<i64: 1, 64>}, {pipeline_mode = #tpu.pipeline_mode<synchronous>, transform_indices = @transform_3, window_bounds = array<i64: 64, 64>}, {pipeline_mode = #tpu.pipeline_mode<synchronous>, transform_indices = @transform_4, window_bounds = array<i64: 1, 64>}, {transform_indices = @transform_5, window_bounds = array<i64: 1, 64, 64>}, {transform_indices = @transform_6, window_bounds = array<i64: 1, 1, 64>}, {transform_indices = @transform_7, window_bounds = array<i64: 1, 64, 4>}, {transform_indices = @transform_8, window_bounds = array<i64: 1, 1, 4>}, {transform_indices = @transform_9, window_bounds = array<i64: 8, 4>}]} {
    %c0 = arith.constant 0 : index
    %c0_0 = arith.constant 0 : index
    %0 = vector.load %arg2[%c0, %c0_0] : memref<8x2xf32, #tpu.memory_space<vmem>>, vector<8x2xf32>
    %c0_1 = arith.constant 0 : index
    %c0_2 = arith.constant 0 : index
    %1 = vector.load %arg3[%c0_1, %c0_2] : memref<2x64xf32, #tpu.memory_space<vmem>>, vector<2x64xf32>
    %cst = arith.constant dense<0.000000e+00> : vector<8x64xf32>
    %2 = tpu.matmul %0, %1, %cst {dimension_numbers = #tpu.dot_dimension_numbers<[1], [0], [0], [1], [0, 0, 1, 1], [], []>} : vector<8x2xf32>, vector<2x64xf32>, vector<8x64xf32> -> vector<8x64xf32>
    %c0_3 = arith.constant 0 : index
    %c0_4 = arith.constant 0 : index
    %3 = vector.load %arg4[%c0_3, %c0_4] : memref<1x64xf32, #tpu.memory_space<vmem>>, vector<1x64xf32>
    %4 = vector.broadcast %3 : vector<1x64xf32> to vector<8x64xf32>
    %5 = arith.addf %2, %4 : vector<8x64xf32>
    %cst_5 = arith.constant 0.000000e+00 : f32
    %6 = vector.broadcast %cst_5 : f32 to vector<8x64xf32>
    %7 = arith.maximumf %5, %6 : vector<8x64xf32>
    %c0_6 = arith.constant 0 : index
    %c0_7 = arith.constant 0 : index
    %8 = vector.load %arg5[%c0_6, %c0_7] : memref<64x64xf32, #tpu.memory_space<vmem>>, vector<64x64xf32>
    %cst_8 = arith.constant dense<0.000000e+00> : vector<8x64xf32>
    %9 = tpu.matmul %7, %8, %cst_8 {dimension_numbers = #tpu.dot_dimension_numbers<[1], [0], [0], [1], [0, 0, 1, 1], [], []>} : vector<8x64xf32>, vector<64x64xf32>, vector<8x64xf32> -> vector<8x64xf32>
    %c0_9 = arith.constant 0 : index
    %c0_10 = arith.constant 0 : index
    %10 = vector.load %arg6[%c0_9, %c0_10] : memref<1x64xf32, #tpu.memory_space<vmem>>, vector<1x64xf32>
    %11 = vector.broadcast %10 : vector<1x64xf32> to vector<8x64xf32>
    %12 = arith.addf %9, %11 : vector<8x64xf32>
    %cst_11 = arith.constant 0.000000e+00 : f32
    %13 = vector.broadcast %cst_11 : f32 to vector<8x64xf32>
    %14 = arith.maximumf %12, %13 : vector<8x64xf32>
    %c0_12 = arith.constant 0 : index
    %c0_13 = arith.constant 0 : index
    %c0_14 = arith.constant 0 : index
    %15 = vector.load %arg7[%c0_12, %c0_13, %c0_14] : memref<1x64x64xf32, #tpu.memory_space<vmem>>, vector<1x64x64xf32>
    %16 = vector.shape_cast %15 : vector<1x64x64xf32> to vector<64x64xf32>
    %cst_15 = arith.constant dense<0.000000e+00> : vector<8x64xf32>
    %17 = tpu.matmul %14, %16, %cst_15 {dimension_numbers = #tpu.dot_dimension_numbers<[1], [0], [0], [1], [0, 0, 1, 1], [], []>} : vector<8x64xf32>, vector<64x64xf32>, vector<8x64xf32> -> vector<8x64xf32>
    %c0_16 = arith.constant 0 : index
    %c0_17 = arith.constant 0 : index
    %c0_18 = arith.constant 0 : index
    %18 = vector.load %arg8[%c0_16, %c0_17, %c0_18] : memref<1x1x64xf32, #tpu.memory_space<vmem>>, vector<1x1x64xf32>
    %19 = vector.shape_cast %18 : vector<1x1x64xf32> to vector<1x64xf32>
    %20 = vector.broadcast %19 : vector<1x64xf32> to vector<8x64xf32>
    %21 = arith.addf %17, %20 : vector<8x64xf32>
    %cst_19 = arith.constant 0.000000e+00 : f32
    %22 = vector.broadcast %cst_19 : f32 to vector<8x64xf32>
    %23 = arith.maximumf %21, %22 : vector<8x64xf32>
    %c0_20 = arith.constant 0 : index
    %c0_21 = arith.constant 0 : index
    %c0_22 = arith.constant 0 : index
    %24 = vector.load %arg9[%c0_20, %c0_21, %c0_22] : memref<1x64x4xf32, #tpu.memory_space<vmem>>, vector<1x64x4xf32>
    %25 = vector.shape_cast %24 : vector<1x64x4xf32> to vector<64x4xf32>
    %cst_23 = arith.constant dense<0.000000e+00> : vector<8x4xf32>
    %26 = tpu.matmul %23, %25, %cst_23 {dimension_numbers = #tpu.dot_dimension_numbers<[1], [0], [0], [1], [0, 0, 1, 1], [], []>} : vector<8x64xf32>, vector<64x4xf32>, vector<8x4xf32> -> vector<8x4xf32>
    %c0_24 = arith.constant 0 : index
    %c0_25 = arith.constant 0 : index
    %c0_26 = arith.constant 0 : index
    %27 = vector.load %arg10[%c0_24, %c0_25, %c0_26] : memref<1x1x4xf32, #tpu.memory_space<vmem>>, vector<1x1x4xf32>
    %28 = vector.shape_cast %27 : vector<1x1x4xf32> to vector<1x4xf32>
    %29 = vector.broadcast %28 : vector<1x4xf32> to vector<8x4xf32>
    %30 = arith.addf %26, %29 : vector<8x4xf32>
    %cst_27 = arith.constant 0.000000e+00 : f32
    %31 = vector.broadcast %cst_27 : f32 to vector<8x4xf32>
    %32 = arith.maximumf %30, %31 : vector<8x4xf32>
    %33 = tpu.iota {dimensions = array<i32: 1>} : vector<8x4xi32>
    %c2_i32 = arith.constant 2 : i32
    %34 = vector.broadcast %c2_i32 : i32 to vector<8x4xi32>
    %35 = arith.cmpi slt, %33, %34 : vector<8x4xi32>
    %cst_28 = arith.constant 5.000000e-01 : f32
    %36 = vector.broadcast %cst_28 : f32 to vector<8x4xf32>
    %37 = arith.mulf %36, %32 : vector<8x4xf32>
    %38 = math.exp %37 : vector<8x4xf32>
    %39 = arith.select %35, %32, %38 : vector<8x4xi1>, vector<8x4xf32>
    %c0_29 = arith.constant 0 : index
    %c0_30 = arith.constant 0 : index
    %40 = vector.load %arg11[%c0_29, %c0_30] : memref<8x4xf32, #tpu.memory_space<vmem>>, vector<8x4xf32>
    tpu.vector_store %arg11[%c0_29, %c0_30], %39 {strides = array<i32>} : memref<8x4xf32, #tpu.memory_space<vmem>>, vector<8x4xf32>,
    return
  }
  func.func @transform_0(%arg0: i32, %arg1: memref<1xi32, #tpu.memory_space<smem>>) -> (i32, i32) {
    %c0_i32 = arith.constant 0 : i32
    %c0_i32_0 = arith.constant 0 : i32
    return %arg0, %c0_i32 : i32, i32
  }
  func.func @transform_1(%arg0: i32, %arg1: memref<1xi32, #tpu.memory_space<smem>>) -> (i32, i32) {
    %c0_i32 = arith.constant 0 : i32
    %c0_i32_0 = arith.constant 0 : i32
    %c0_i32_1 = arith.constant 0 : i32
    return %c0_i32, %c0_i32_0 : i32, i32
  }
  func.func @transform_2(%arg0: i32, %arg1: memref<1xi32, #tpu.memory_space<smem>>) -> (i32, i32) {
    %c0_i32 = arith.constant 0 : i32
    %c0_i32_0 = arith.constant 0 : i32
    %c0_i32_1 = arith.constant 0 : i32
    return %c0_i32, %c0_i32_0 : i32, i32
  }
  func.func @transform_3(%arg0: i32, %arg1: memref<1xi32, #tpu.memory_space<smem>>) -> (i32, i32) {
    %c0_i32 = arith.constant 0 : i32
    %c0_i32_0 = arith.constant 0 : i32
    %c0_i32_1 = arith.constant 0 : i32
    return %c0_i32, %c0_i32_0 : i32, i32
  }
  func.func @transform_4(%arg0: i32, %arg1: memref<1xi32, #tpu.memory_space<smem>>) -> (i32, i32) {
    %c0_i32 = arith.constant 0 : i32
    %c0_i32_0 = arith.constant 0 : i32
    %c0_i32_1 = arith.constant 0 : i32
    return %c0_i32, %c0_i32_0 : i32, i32
  }
  func.func @transform_5(%arg0: i32, %arg1: memref<1xi32, #tpu.memory_space<smem>>) -> (i32, i32, i32) {
    %c0 = arith.constant 0 : index
    %0 = memref.load %arg1[%c0] : memref<1xi32, #tpu.memory_space<smem>>
    %c0_i32 = arith.constant 0 : i32
    %c0_i32_0 = arith.constant 0 : i32
    %c0_i32_1 = arith.constant 0 : i32
    return %0, %c0_i32, %c0_i32_0 : i32, i32, i32
  }
  func.func @transform_6(%arg0: i32, %arg1: memref<1xi32, #tpu.memory_space<smem>>) -> (i32, i32, i32) {
    %c0 = arith.constant 0 : index
    %0 = memref.load %arg1[%c0] : memref<1xi32, #tpu.memory_space<smem>>
    %c0_i32 = arith.constant 0 : i32
    %c0_i32_0 = arith.constant 0 : i32
    %c0_i32_1 = arith.constant 0 : i32
    return %0, %c0_i32, %c0_i32_0 : i32, i32, i32
  }
  func.func @transform_7(%arg0: i32, %arg1: memref<1xi32, #tpu.memory_space<smem>>) -> (i32, i32, i32) {
    %c0 = arith.constant 0 : index
    %0 = memref.load %arg1[%c0] : memref<1xi32, #tpu.memory_space<smem>>
    %c0_i32 = arith.constant 0 : i32
    %c0_i32_0 = arith.constant 0 : i32
    %c0_i32_1 = arith.constant 0 : i32
    return %0, %c0_i32, %c0_i32_0 : i32, i32, i32
  }
  func.func @transform_8(%arg0: i32, %arg1: memref<1xi32, #tpu.memory_space<smem>>) -> (i32, i32, i32) {
    %c0 = arith.constant 0 : index
    %0 = memref.load %arg1[%c0] : memref<1xi32, #tpu.memory_space<smem>>
    %c0_i32 = arith.constant 0 : i32
    %c0_i32_0 = arith.constant 0 : i32
    %c0_i32_1 = arith.constant 0 : i32
    return %0, %c0_i32, %c0_i32_0 : i32, i32, i32
  }
  func.func @transform_9(%arg0: i32, %arg1: memref<1xi32, #tpu.memory_space<smem>>) -> (i32, i32) {
    %c0_i32 = arith.constant 0 : i32
    %c0_i32_0 = arith.constant 0 : i32
    return %arg0, %c0_i32 : i32, i32
  }
}

</mosaic_0001>

<bundles_post_ra>
// kernel: _call_kernel.1
= control target key start
LH: loop header
LB: loop body
LE: loop exit
PB: predicated region body
PF: predicated region fallthrough
CT: control target
= control target key end

     0   :  { %vm115_vm0 = vcmask 1041408   ;;  %vm111_vm1 = vcmask 15360   ;;  %v599_v0 = vmov 0.0   ;;  %vm600_vm2 = vmmov 0   ;;  %s768_s2 = inlined_call_operand.vmem [shape: f32[2,64], index: 2, kind: input, shape index: {}]   ;;  %s769_s1 = inlined_call_operand.vmem [shape: f32[8,2], index: 1, kind: input, shape index: {}]   ;;  %s770_s4 = inlined_call_operand.vmem [shape: f32[64,64], index: 4, kind: input, shape index: {}]   ;;  %s771_s0 = inlined_call_operand.<no memory space> [shape: s32[1], index: 0, kind: input, shape index: {}]   ;;  %s772_s6 = inlined_call_operand.vmem [shape: f32[40,64,64], index: 6, kind: input, shape index: {}]   ;;  %s773_s3 = inlined_call_operand.vmem [shape: f32[1,64], index: 3, kind: input, shape index: {}]   ;;  %s774_s8 = inlined_call_operand.vmem [shape: f32[40,64,4], index: 8, kind: input, shape index: {}]   ;;  %s775_s5 = inlined_call_operand.vmem [shape: f32[1,64], index: 5, kind: input, shape index: {}]   ;;  %s776_s7 = inlined_call_operand.vmem [shape: f32[40,1,64], index: 7, kind: input, shape index: {}]   ;;  %s777_s9 = inlined_call_operand.vmem [shape: f32[40,1,4], index: 9, kind: input, shape index: {}]   ;;  %s778_s10 = inlined_call_operand.vmem [shape: f32[8,4], index: 10, kind: output, shape index: {}]  }
   0x1   :  { %533 = vmatprep.subr.mxu0 %v599_v0  ;;  %v103_v1 = vld [vmem:[%s768_s2] sm:$0x3]  ;;  %535 = vmatprep.mubr.msk.f32.mxu0 %vm600_vm2, %v599_v0  ;;  %v197_v3 = vld [vmem:[%s770_s4 + $0x38] sm:$0xff]  ;;  %v196_v4 = vld [vmem:[%s770_s4 + $0x30] sm:$0xff]  ;;  %p79_p0 = scmp.lt.s32.totalorder %s771_s0, 39  ;;  %vm205_vm3 = vcmask 523264   ;;  %v458_v49 = vlaneseq }
   0x2   :  { %v102_v2 = vld [vmem:[%s769_s1] sm:$0xff]  ;;  %534 = vmatpush3.msk.msra.mxu0 %vm115_vm0, %v103_v1  ;;  %538 = vmatprep.subr.mxu1 %v599_v0  ;;  %v195_v5 = vld [vmem:[%s770_s4 + $0x28] sm:$0xff]  ;;  %v193_v7 = vld [vmem:[%s770_s4 + $0x18] sm:$0xff]  ;;  %vm465_vm5 = vcmask 31744  }
   0x3   :  { %536 = vmatmul.mubr.msk.f32.vlgmr.msra.gmra.mxu0 %vm111_vm1, %v102_v2  ;;  %539 = vmatpush3.msra.mxu1 %v197_v3  ;;  %v194_v6 = vld [vmem:[%s770_s4 + $0x20] sm:$0xff]  ;;  %v192_v8 = vld [vmem:[%s770_s4 + $0x10] sm:$0xff]  ;;  %v191_v9 = vld [vmem:[%s770_s4 + $0x8] sm:$0xff]  ;;  %s780_s0 = smov (!%p79_p0, %s771_s0), 39  ;;  %v459_v50 = vand.u32 127, %v458_v49 }
   0x4   :  { %540 = vmatprep.subr.mxu1 %v599_v0  ;;  %554 = vmatprep.mubr.msk.f32.mxu1 %vm600_vm2, %v599_v0  ;;  %v190_v10 = vld [vmem:[%s770_s4] sm:$0xff]  ;;  %s502_s15 = sshll.u32 %s780_s0, 6  ;;  %s100_s24 = scalar_lea.vmem %s777_s9, %s780_s0 }
   0x5   :  { %541 = vmatpush3.msra.mxu1 %v196_v4  ;;  %557 = vmatprep.subr.mxu0 %v599_v0  ;;  %s717_s4 = scalar_lea.vmem %s772_s6, %s502_s15  ;;  %v493_v16 = vld [vmem:[%s773_s3] ss:$0 sm:$0xff]  ;;  %s95_s20 = scalar_lea.vmem %s774_s8, %s502_s15  ;;  %vm460_vm4 = vcmp.lt.s32.totalorder %v459_v50, 2 }
   0x6   :  { %542 = vmatprep.subr.mxu1 %v599_v0  ;;  %573 = vmatprep.mubr.msk.f32.mxu0 %vm600_vm2, %v599_v0  ;;  %v287_v11 = vld [vmem:[%s717_s4 + $0x38] sm:$0xff]  ;;  %v286_v12 = vld [vmem:[%s717_s4 + $0x30] sm:$0xff]  ;;  %v285_v13 = vld [vmem:[%s717_s4 + $0x28] sm:$0xff] }
   0x7   :  { %543 = vmatpush3.msra.mxu1 %v195_v5  ;;  %558 = vmatpush3.msra.mxu0 %v287_v11  ;;  %v284_v14 = vld [vmem:[%s717_s4 + $0x20] sm:$0xff]  ;;  %v283_v15 = vld [vmem:[%s717_s4 + $0x18] sm:$0xff]  ;;  %v282_v21 = vld [vmem:[%s717_s4 + $0x10] sm:$0xff] }
   0x8   :  { %544 = vmatprep.subr.mxu1 %v599_v0  ;;  %559 = vmatprep.subr.mxu0 %v599_v0  ;;  %v281_v22 = vld [vmem:[%s717_s4 + $0x8] sm:$0xff]  ;;  %v280_v23 = vld [vmem:[%s717_s4] sm:$0xff]  ;;  %v376_v24 = vld [vmem:[%s95_s20 + $0x38] sm:$0xff] }
   0x9   :  { %545 = vmatpush3.msra.mxu1 %v194_v6  ;;  %560 = vmatpush3.msra.mxu0 %v286_v12  ;;  %v375_v25 = vld [vmem:[%s95_s20 + $0x30] sm:$0xff]  ;;  %v374_v26 = vld [vmem:[%s95_s20 + $0x28] sm:$0xff]  ;;  %v373_v27 = vld [vmem:[%s95_s20 + $0x20] sm:$0xff] }
   0xa   :  { %546 = vmatprep.subr.mxu1 %v599_v0  ;;  %561 = vmatprep.subr.mxu0 %v599_v0  ;;  %v372_v28 = vld [vmem:[%s95_s20 + $0x18] sm:$0xff]  ;;  %v496_v29 = vld [vmem:[%s775_s5] ss:$0 sm:$0xff]  ;;  %v371_v34 = vld [vmem:[%s95_s20 + $0x10] sm:$0xff]  ;;  %s88_s5 = scalar_lea.vmem %s776_s7, %s780_s0 }
   0xb   :  { %547 = vmatpush3.msra.mxu1 %v193_v7  ;;  %562 = vmatpush3.msra.mxu0 %v285_v13  ;;  %v370_v35 = vld [vmem:[%s95_s20 + $0x8] sm:$0xff]  ;;  %v369_v36 = vld [vmem:[%s95_s20] sm:$0xff] }
   0xc   :  { %548 = vmatprep.subr.mxu1 %v599_v0  ;;  %563 = vmatprep.subr.mxu0 %v599_v0  ;;  %v498_v37 = vld [vmem:[%s88_s5] ss:$0 sm:$0xff] }
   0xd   :  { %549 = vmatpush3.msra.mxu1 %v192_v8  ;;  %564 = vmatpush3.msra.mxu0 %v284_v14  ;;  %v500_v42 = vld [vmem:[%s100_s24] ss:$0 sm:$0xff] }
   0xe   :  { %550 = vmatprep.subr.mxu1 %v599_v0  ;;  %565 = vmatprep.subr.mxu0 %v599_v0 }
   0xf   :  { %551 = vmatpush3.msra.mxu1 %v191_v9  ;;  %566 = vmatpush3.msra.mxu0 %v283_v15 }
  0x10   :  { %552 = vmatprep.subr.mxu1 %v599_v0  ;;  %567 = vmatprep.subr.mxu0 %v599_v0 }
  0x11   :  { %553 = vmatpush3.msra.mxu1 %v190_v10  ;;  %568 = vmatpush3.msra.mxu0 %v282_v21 }
  0x12   :  { %576 = vmatprep.subr.mxu1 %v599_v0  ;;  %569 = vmatprep.subr.mxu0 %v599_v0 }
  0x13   :  { %570 = vmatpush3.msra.mxu0 %v281_v22 }
  0x14   :  { %571 = vmatprep.subr.mxu0 %v599_v0 }
  0x15   :  { %572 = vmatpush3.msra.mxu0 %v280_v23 }
  0xc3   :  { %v185_v17 = vpop.f32.mrf.mxu0 }
  0xc4   :  { %v186_v18 = vadd.f32 %v493_v16, %v185_v17 }
  0xc5   :  { %v537_v19 = vpop.f32.mrf.mxu0 }
  0xc6   :  { %v189_v20 = vmax.f32 %v186_v18, 0.0 }
  0xc8   :  { %555 = vmatmul.mubr.msk.f32.vlgmr.msra.gmra.mxu1 %vm205_vm3, %v189_v20 }
  0xc9   :  { %592 = vmatprep.mubr.msk.f32.mxu1 %vm600_vm2, %v599_v0  ;;  %577 = vmatpush3.msra.mxu1 %v376_v24 }
  0xca   :  { %578 = vmatprep.subr.mxu1 %v599_v0 }
  0xcb   :  { %579 = vmatpush3.msra.mxu1 %v375_v25 }
  0xcc   :  { %580 = vmatprep.subr.mxu1 %v599_v0 }
  0xcd   :  { %581 = vmatpush3.msra.mxu1 %v374_v26 }
  0xce   :  { %582 = vmatprep.subr.mxu1 %v599_v0 }
  0xcf   :  { %583 = vmatpush3.msra.mxu1 %v373_v27 }
  0xd0   :  { %584 = vmatprep.subr.mxu1 %v599_v0 }
  0xd1   :  { %585 = vmatpush3.msra.mxu1 %v372_v28 }
  0xd2   :  { %586 = vmatprep.subr.mxu1 %v599_v0 }
  0xd3   :  { %587 = vmatpush3.msra.mxu1 %v371_v34 }
  0xd4   :  { %588 = vmatprep.subr.mxu1 %v599_v0 }
  0xd5   :  { %589 = vmatpush3.msra.mxu1 %v370_v35 }
  0xd6   :  { %590 = vmatprep.subr.mxu1 %v599_v0 }
  0xd7   :  { %591 = vmatpush3.msra.mxu1 %v369_v36 }
 0x188   :  { %v275_v30 = vpop.f32.mrf.mxu1 }
 0x189   :  { %v276_v31 = vadd.f32 %v496_v29, %v275_v30 }
 0x18a   :  { %v556_v32 = vpop.f32.mrf.mxu1 }
 0x18b   :  { %v279_v33 = vmax.f32 %v276_v31, 0.0 }
 0x18d   :  { %574 = vmatmul.mubr.msk.f32.vlgmr.msra.gmra.mxu0 %vm205_vm3, %v279_v33 }
 0x24d   :  { %v364_v38 = vpop.f32.mrf.mxu0 }
 0x24e   :  { %v365_v39 = vadd.f32 %v498_v37, %v364_v38 }
 0x24f   :  { %v575_v40 = vpop.f32.mrf.mxu0 }
 0x250   :  { %v368_v41 = vmax.f32 %v365_v39, 0.0 }
 0x252   :  { %593 = vmatmul.mubr.msk.f32.vlgmr.msra.gmra.mxu1 %vm205_vm3, %v368_v41 }
 0x312   :  { %v453_v43 = vpop.f32.mrf.mxu1 }
 0x313   :  { %v454_v44 = vadd.f32 %v500_v42, %v453_v43 }
 0x314   :  { %v594_v45 = vpop.f32.mrf.mxu1 }
 0x315   :  { %v457_v46 = vmax.f32 %v454_v44, 0.0 }
 0x317   :  { %v461_v47 = vmul.f32 0.5, %v457_v46 }
 0x319   :  { %v462_v48 = vmul.f32 1.442695, %v461_v47 }
 0x31b   :  { %597 = vpow2.f32 %v462_v48 }
 0x328   :  { %v598_v51 = vpop.eup %597 }
 0x329   :  { %v464_v52 = vsel %vm460_vm4, %v457_v46, %v598_v51 }
 0x32a   :  { %466 = vst.msk [vmem:[%s778_s10] sm:$0xff] %vm465_vm5, %v464_v52 }

</bundles_post_ra>
